<compile_context>
chip_gen: v6e
topology: v6e:2x2x1
jax: 0.10.0
libtpu: 0.0.40
codegen_flags: <defaults>
</compile_context>

<pallas_src>
import math

import jax
import jax.numpy as jnp
from jax.experimental import pallas as pl
from jax.experimental.pallas import tpu as pltpu


_SMALL_BYPASS_BYTES = 1 << 20          # below this, a fused XLA add beats a kernel launch
_VMEM_LIMIT_BYTES = 48 * 1024 * 1024   # explicit: v5e scoped default is only 16 MiB


def _build_pe(max_len: int, d_model: int) -> jnp.ndarray:
    """Deterministic sinusoidal positional-encoding buffer, same as __init__."""
    assert d_model % 2 == 0, "d_model must be even (same latent assumption as the torch code)"
    position = jnp.arange(0, max_len, dtype=jnp.float32)[:, None]          # (L, 1)
    div_term = jnp.exp(jnp.arange(0, d_model, 2, dtype=jnp.float32)
                       * (-math.log(10000.0) / d_model))                   # (D/2,)
    pe = jnp.zeros((max_len, d_model), dtype=jnp.float32)
    pe = pe.at[:, 0::2].set(jnp.sin(position * div_term))
    pe = pe.at[:, 1::2].set(jnp.cos(position * div_term))
    # unsqueeze(0).transpose(0,1).view(-1, d_model) is a no-op on values/shape.
    return pe


def _pos_enc_kernel(x_ref, pe_ref, o_ref):
    # Elementwise add; pe block is (1, bc) fp32 and broadcasts over the row
    # (sublane) axis of the (br, bc) x block.  Accumulate in fp32 and cast on
    # store (matches torch's fp32 pe add).  Dropout is identity (eval mode).
    o_ref[...] = (x_ref[...].astype(jnp.float32) + pe_ref[...]).astype(o_ref.dtype)


def _device_kind() -> str:
    try:
        return jax.devices()[0].device_kind.lower()
    except Exception:
        return ""


def _target_block_bytes() -> int:
    # v7x: ~3.2 TB/s per-TC HBM -> a 1 MiB block is ~1 us of traffic, so the
    # ~0.35 us fixed per-grid-step overhead is 25-35% of step time; 4 MiB cuts
    # that to <10%.  v5e/v6e: ~85% of roofline already at 1 MiB; bigger ~1%.
    return (4 << 20) if "v7" in _device_kind() else (1 << 20)


def _min_row_blocks() -> int:
    # v7x has 2 TensorCores/chip; make sure a "parallel" grid axis has >= 2
    # blocks so megacore sharding can engage.  Irrelevant on v5e/v6e (1 TC).
    return 2 if "v7" in _device_kind() else 1


def _choose_tiles(nrows: int, ncols: int, itemsize: int,
                  target_bytes: int, min_row_blocks: int):
    """Pick (block_rows, block_cols) for a bandwidth-bound 2-D elementwise add."""
    # Sublane packing multiple for the second-to-last block dim.
    sub = {4: 8, 2: 16, 1: 32}.get(itemsize, 8)

    # Column (lane) tile: full width whenever one flattened row fits the budget
    # (one contiguous HBM region per DMA, pe block index pinned to (0, 0)).
    # Split columns only when a single row exceeds the budget and the row
    # length is 128-aligned; non-aligned rows must stay full-dim anyway.
    if ncols * itemsize <= target_bytes or ncols % 128 != 0:
        bc = ncols
        # TODO(synk): a non-128-multiple row larger than the budget would force
        # an oversized full-width block; typical max_len*d_model is 128-aligned.
    else:
        bc = min(ncols, max(128, (target_bytes // (sub * itemsize)) // 128 * 128))

    # Row (sublane) tile: fill the remaining budget; multiple of `sub` or full.
    rows_budget = max(1, target_bytes // (bc * itemsize))
    if rows_budget >= nrows or nrows <= sub:
        br = nrows
    else:
        br = max(sub, (rows_budget // sub) * sub)

    # v7x megacore: guarantee >= min_row_blocks row blocks when batch allows.
    if (min_row_blocks > 1 and pl.cdiv(nrows, br) < min_row_blocks
            and nrows >= min_row_blocks * sub):
        br = max(sub, (br // min_row_blocks // sub) * sub)

    return br, bc


def positional_encoding_forward(x: jnp.ndarray, pe: jnp.ndarray, batch_size: int,
                                *, donate_x: bool = False,
                                force_pallas: bool = False) -> jnp.ndarray:
    """out = dropout(x + pe.repeat(batch_size, 1)); dropout is identity (eval).

    x:  [batch_size * max_len, d_model]
    pe: [max_len, d_model]  (fp32 sinusoidal buffer)
    """
    max_len, d_model = pe.shape
    assert x.shape == (batch_size * max_len, d_model)

    # Flatten each batch's [max_len, d_model] slab into one lane-dense row.
    # Exact: pe.repeat(batch_size, 1) repeats whole slabs, so the flattened
    # broadcast add computes the identical elementwise result.
    row_len = max_len * d_model
    x2 = x.reshape(batch_size, row_len)
    pe2 = pe.astype(jnp.float32).reshape(1, row_len)   # keep pe fp32; add in fp32

    itemsize = jnp.dtype(x.dtype).itemsize
    total_bytes = batch_size * row_len * itemsize

    # Tiny tensors: the kernel launch + pipeline prologue/epilogue dwarf the
    # actual HBM traffic; let XLA fuse the add instead (same fp32 accumulate).
    if not force_pallas and total_bytes < _SMALL_BYPASS_BYTES:
        out2 = (x2.astype(jnp.float32) + pe2).astype(x.dtype)
        return out2.reshape(batch_size * max_len, d_model)

    br, bc = _choose_tiles(batch_size, row_len, itemsize,
                           _target_block_bytes(), _min_row_blocks())

    # Grid: column blocks OUTER, row blocks INNER.  pe's block index depends
    # only on the outer (column) index, so its tile is re-fetched only when
    # that index changes -- exactly once per distinct pe chunk, and exactly
    # once overall in the common full-width (bc == row_len) case.
    grid = (pl.cdiv(row_len, bc), pl.cdiv(batch_size, br))
    pe_resident = grid[0] == 1   # pe block index constant across the whole grid

    def call(pe_single_buffered: bool):
        pe_kwargs = {"pipeline_mode": pl.Buffered(1)} if pe_single_buffered else {}
        return pl.pallas_call(
            _pos_enc_kernel,
            out_shape=jax.ShapeDtypeStruct((batch_size, row_len), x.dtype),
            grid_spec=pltpu.PrefetchScalarGridSpec(
                num_scalar_prefetch=0,
                grid=grid,
                in_specs=[
                    # x tile: (br, bc) at block index (row=r, col=c)
                    pl.BlockSpec((br, bc), lambda c, r: (r, c)),
                    # pe tile: one shared row, depends only on the OUTER axis.
                    pl.BlockSpec((1, bc), lambda c, r: (0, c), **pe_kwargs),
                ],
                out_specs=pl.BlockSpec((br, bc), lambda c, r: (r, c)),
            ),
            compiler_params=pltpu.CompilerParams(
                dimension_semantics=("parallel", "parallel"),
                vmem_limit_bytes=_VMEM_LIMIT_BYTES,
            ),
            # Alias x2 -> out when the caller donates x: no extra HBM output
            # allocation / copy at the call boundary.
            input_output_aliases=({0: 0} if donate_x else {}),
        )(x2, pe2)

    try:
        # pe never changes between consecutive steps when resident, so single-
        # buffer it (saves one bc*4-byte VMEM buffer + a DMA descriptor/step).
        out2 = call(pe_single_buffered=pe_resident)
    except Exception:
        # Fallback if pipeline_mode / Buffered(1) is unsupported on this jax.
        out2 = call(pe_single_buffered=False)

    return out2.reshape(batch_size * max_len, d_model)


if __name__ == "__main__":
    # Small shapes consistent with the module's forward:
    # d_model=32, max_len=8 (the "seq" length of the pe buffer), batch=2.
    d_model = 32
    max_len = 8
    batch_size = 2

    pe = _build_pe(max_len, d_model)

    key = jax.random.PRNGKey(0)
    x = jax.random.normal(key, (batch_size * max_len, d_model), dtype=jnp.float32)

    # Reference in plain JAX (pe.repeat(batch_size, 1) == tile along rows).
    ref = x + jnp.tile(pe, (batch_size, 1))

    # 1) Force the Pallas path (these shapes are tiny, so the default path
    #    would take the small-shape XLA bypass) -- exercises the real kernel.
    out_pallas = positional_encoding_forward(x, pe, batch_size, force_pallas=True)
    out_pallas = jax.block_until_ready(out_pallas)
    assert out_pallas.shape == x.shape
    assert jnp.allclose(out_pallas, ref, atol=1e-6), "pallas path mismatch vs reference"

    # 2) Default path (small-shape bypass) must match as well.
    out_bypass = jax.block_until_ready(positional_encoding_forward(x, pe, batch_size))
    assert jnp.allclose(out_bypass, ref, atol=1e-6), "bypass path mismatch vs reference"

    print("KERNEL_OK")
</pallas_src>

<mosaic_0001>
module attributes {stable_mosaic.version = 11 : i64} {
  func.func @_pos_enc_kernel(%arg0: i32, %arg1: i32, %arg2: memref<2x256xf32, #tpu.memory_space<vmem>>, %arg3: memref<1x256xf32, #tpu.memory_space<vmem>>, %arg4: memref<2x256xf32, #tpu.memory_space<vmem>>) attributes {dimension_semantics = [#tpu.dimension_semantics<parallel>, #tpu.dimension_semantics<parallel>], iteration_bounds = array<i64: 1, 1>, scalar_prefetch = 0 : i64, scratch_operands = 0 : i64, tpu.core_type = #tpu.core_type<tc>, window_params = [{transform_indices = @transform_0, window_bounds = array<i64: 2, 256>}, {pipeline_mode = #tpu.pipeline_mode<synchronous>, transform_indices = @transform_1, window_bounds = array<i64: 1, 256>}, {transform_indices = @transform_2, window_bounds = array<i64: 2, 256>}]} {
    %c0 = arith.constant 0 : index
    %c0_0 = arith.constant 0 : index
    %0 = vector.load %arg2[%c0, %c0_0] : memref<2x256xf32, #tpu.memory_space<vmem>>, vector<2x256xf32>
    %c0_1 = arith.constant 0 : index
    %c0_2 = arith.constant 0 : index
    %1 = vector.load %arg3[%c0_1, %c0_2] : memref<1x256xf32, #tpu.memory_space<vmem>>, vector<1x256xf32>
    %2 = vector.broadcast %1 : vector<1x256xf32> to vector<2x256xf32>
    %3 = arith.addf %0, %2 : vector<2x256xf32>
    %c0_3 = arith.constant 0 : index
    %c0_4 = arith.constant 0 : index
    %4 = vector.load %arg4[%c0_3, %c0_4] : memref<2x256xf32, #tpu.memory_space<vmem>>, vector<2x256xf32>
    tpu.vector_store %arg4[%c0_3, %c0_4], %3 {strides = array<i32>} : memref<2x256xf32, #tpu.memory_space<vmem>>, vector<2x256xf32>,
    return
  }
  func.func @transform_0(%arg0: i32, %arg1: i32) -> (i32, i32) {
    %c0_i32 = arith.constant 0 : i32
    return %arg1, %arg0 : i32, i32
  }
  func.func @transform_1(%arg0: i32, %arg1: i32) -> (i32, i32) {
    %c0_i32 = arith.constant 0 : i32
    %c0_i32_0 = arith.constant 0 : i32
    return %c0_i32, %arg0 : i32, i32
  }
  func.func @transform_2(%arg0: i32, %arg1: i32) -> (i32, i32) {
    %c0_i32 = arith.constant 0 : i32
    return %arg1, %arg0 : i32, i32
  }
}

module attributes {stable_mosaic.version = 11 : i64} {
  func.func @_pos_enc_kernel(%arg0: i32, %arg1: i32, %arg2: memref<2x256xf32, #tpu.memory_space<vmem>>, %arg3: memref<1x256xf32, #tpu.memory_space<vmem>>, %arg4: memref<2x256xf32, #tpu.memory_space<vmem>>) attributes {dimension_semantics = [#tpu.dimension_semantics<parallel>, #tpu.dimension_semantics<parallel>], iteration_bounds = array<i64: 1, 1>, scalar_prefetch = 0 : i64, scratch_operands = 0 : i64, tpu.core_type = #tpu.core_type<tc>, window_params = [{transform_indices = @transform_0, window_bounds = array<i64: 2, 256>}, {transform_indices = @transform_1, window_bounds = array<i64: 1, 256>}, {transform_indices = @transform_2, window_bounds = array<i64: 2, 256>}]} {
    %c0 = arith.constant 0 : index
    %c0_0 = arith.constant 0 : index
    %0 = vector.load %arg2[%c0, %c0_0] : memref<2x256xf32, #tpu.memory_space<vmem>>, vector<2x256xf32>
    %c0_1 = arith.constant 0 : index
    %c0_2 = arith.constant 0 : index
    %1 = vector.load %arg3[%c0_1, %c0_2] : memref<1x256xf32, #tpu.memory_space<vmem>>, vector<1x256xf32>
    %2 = vector.broadcast %1 : vector<1x256xf32> to vector<2x256xf32>
    %3 = arith.addf %0, %2 : vector<2x256xf32>
    %c0_3 = arith.constant 0 : index
    %c0_4 = arith.constant 0 : index
    %4 = vector.load %arg4[%c0_3, %c0_4] : memref<2x256xf32, #tpu.memory_space<vmem>>, vector<2x256xf32>
    tpu.vector_store %arg4[%c0_3, %c0_4], %3 {strides = array<i32>} : memref<2x256xf32, #tpu.memory_space<vmem>>, vector<2x256xf32>,
    return
  }
  func.func @transform_0(%arg0: i32, %arg1: i32) -> (i32, i32) {
    %c0_i32 = arith.constant 0 : i32
    return %arg1, %arg0 : i32, i32
  }
  func.func @transform_1(%arg0: i32, %arg1: i32) -> (i32, i32) {
    %c0_i32 = arith.constant 0 : i32
    %c0_i32_0 = arith.constant 0 : i32
    return %c0_i32, %arg0 : i32, i32
  }
  func.func @transform_2(%arg0: i32, %arg1: i32) -> (i32, i32) {
    %c0_i32 = arith.constant 0 : i32
    return %arg1, %arg0 : i32, i32
  }
}

</mosaic_0001>

<bundles_post_ra>
// kernel: tpu_custom_call.1
= control target key start
LH: loop header
LB: loop body
LE: loop exit
PB: predicated region body
PF: predicated region fallthrough
CT: control target
= control target key end

     0   :  { %7 = vsyncpa [#allocation3], 0  ;;  %s172_s0 = inlined_call_operand.hbm [shape: f32[2,256], index: 0, kind: input, shape index: {}]   ;;  %s173_s1 = inlined_call_operand.hbm [shape: f32[1,256], index: 1, kind: input, shape index: {}]   ;;  %s174_s2 = inlined_call_operand.hbm [shape: f32[2,256], index: 2, kind: output, shape index: {}]  }
   0x1   :  { %8 = vsyncpa [#allocation6], 0 }
   0x2   :  { %9 = vsyncpa [#allocation4], 0  ;;  %s144_s9 = smov [#allocation2]   ;;  %s145_s11 = smov [#allocation5]  }
   0x3   :  { %s16_s10 = sshll.u32 %s144_s9, 4  ;;  %s26_s12 = sshll.u32 %s145_s11, 4  ;;  %s17_s10 = int_to_ptr.vmem [resolvable:$true] %s16_s10  ;;  %s27_s12 = int_to_ptr.vmem [resolvable:$true] %s26_s12 }
   0x4   :  { %s86_s13 = scalar_lea.vmem %s17_s10, 64  ;;  %p91_p1 = scmp.lt.s32.totalorder %s17_s10, %s17_s10 }
   0x5   :  { %p87_p0 = scmp.ne.s32.totalorder %s17_s10, %s86_s13  ;;  %p92_p2 = scmp.lt.s32.totalorder %s86_s13, %s86_s13 }
   0x7   :  { %p93_p3 = por %p92_p2, %p91_p1 }
   0x9   :  { %p94_p4 = pnand %p93_p3, %p87_p0 }
   0xb   :  { %97 = shalt.err (!%p94_p4)
}
   0xc   :  { %19 = dma.hbm_to_vmem [thread:$0]  %s172_s0, 64, %s17_s10, [#allocation3]  }
   0xd   :  { %s106_s16 = scalar_lea.vmem %s27_s12, 32  ;;  %p111_p6 = scmp.lt.s32.totalorder %s27_s12, %s27_s12 }
   0xe   :  { %p107_p5 = scmp.ne.s32.totalorder %s27_s12, %s106_s16  ;;  %p112_p7 = scmp.lt.s32.totalorder %s106_s16, %s106_s16 }
  0x10   :  { %p113_p8 = por %p112_p7, %p111_p6 }
  0x12   :  { %p114_p9 = pnand %p113_p8, %p107_p5 }
  0x14   :  { %117 = shalt.err (!%p114_p9)
}
  0x15   :  { %29 = dma.hbm_to_vmem [thread:$0]  %s173_s1, 32, %s27_s12, [#allocation6]  }
  0x16   :  { %138 = dma.done.wait [#allocation3], 64  }
  0x17   :  { %139 = vsyncadd [#allocation3], 4294967232 }
  0x18   :  { %140 = dma.done.wait [#allocation6], 32  }
  0x19   :  { %141 = vsyncadd [#allocation6], 4294967264  ;;  %v39_v0 = vlaneseq  ;;  %v146_v1 = vmov 1983009808   ;;  %v37_v7 = vld [vmem:[#allocation5] sm:$0x3] }
  0x1a   :  { %v49_v2 = vunpack.c.l.s4 %v146_v1  ;;  %v36_v12 = vld [vmem:[#allocation2] sm:$0xf]  ;;  %s147_s0 = smov [#allocation7]  }
  0x1b   :  { %v40_v3 = vshrl.u32 %v39_v0, 7  ;;  %s64_s19 = sshll.u32 %s147_s0, 4  ;;  %s65_s19 = int_to_ptr.vmem [resolvable:$true] %s64_s19 }
  0x1c   :  { %v50_v6 = vunpack.c.0.s8 %v49_v2  ;;  %s118_s1 = scalar_lea.vmem %s65_s19, 64  ;;  %p123_p11 = scmp.lt.s32.totalorder %s65_s19, %s65_s19 }
  0x1d   :  { %v41_v4 = vsub.s32 0, %v40_v3  ;;  %v45_v5 = vsub.s32 1, %v40_v3  ;;  %p119_p10 = scmp.ne.s32.totalorder %s65_s19, %s118_s1  ;;  %p124_p12 = scmp.lt.s32.totalorder %s118_s1, %s118_s1 }
  0x1e   :  { %v53_v10 = vsub.s32 %v50_v6, %v40_v3 }
  0x1f   :  { %v42_v8 = vrot.slane %v37_v7, %v41_v4  ;;  %v46_v9 = vrot.slane %v37_v7, %v45_v5  ;;  %p125_p13 = por %p124_p12, %p123_p11 }
  0x21   :  { %v47_v11 = vcombine.low %v42_v8, %v46_v9  ;;  %p126_p0 = pnand %p125_p13, %p119_p10 }
  0x23   :  { %v54_v13 = vrot.slane %v47_v11, %v53_v10 }
  0x25   :  { %v56_v14 = vadd.f32 %v54_v13, %v36_v12 }
  0x27   :  { %57 = vst [vmem:[#allocation7] sm:$0xf] %v56_v14 }
  0x28   :  { %129 = shalt.err (!%p126_p0)
}
  0x29   :  { %67 = dma.vmem_to_hbm [thread:$0]  %s65_s19, 64, %s174_s2, [#allocation4]  }
  0x2a   :  { %142 = dma.done.wait [#allocation4], 64  }
  0x2b   :  { %143 = vsyncadd [#allocation4], 4294967232 }
  0x2c   :  { %71 = vsyncpa [#allocation3], 1 }
  0x2d   :  { %72 = vsyncpa [#allocation6], 1 }
  0x2e   :  { %73 = vsyncpa [#allocation4], 1 }

// kernel: tpu_custom_call.1
= control target key start
LH: loop header
LB: loop body
LE: loop exit
PB: predicated region body
PF: predicated region fallthrough
CT: control target
= control target key end

     0   :  { %7 = vsyncpa [#allocation3], 0  ;;  %s172_s0 = inlined_call_operand.hbm [shape: f32[2,256], index: 0, kind: input, shape index: {}]   ;;  %s173_s1 = inlined_call_operand.hbm [shape: f32[1,256], index: 1, kind: input, shape index: {}]   ;;  %s174_s2 = inlined_call_operand.hbm [shape: f32[2,256], index: 2, kind: output, shape index: {}]  }
   0x1   :  { %8 = vsyncpa [#allocation6], 0 }
   0x2   :  { %9 = vsyncpa [#allocation4], 0  ;;  %s144_s9 = smov [#allocation2]   ;;  %s145_s11 = smov [#allocation5]  }
   0x3   :  { %s16_s10 = sshll.u32 %s144_s9, 4  ;;  %s26_s12 = sshll.u32 %s145_s11, 4  ;;  %s17_s10 = int_to_ptr.vmem [resolvable:$true] %s16_s10  ;;  %s27_s12 = int_to_ptr.vmem [resolvable:$true] %s26_s12 }
   0x4   :  { %s86_s13 = scalar_lea.vmem %s17_s10, 64  ;;  %p91_p1 = scmp.lt.s32.totalorder %s17_s10, %s17_s10 }
   0x5   :  { %p87_p0 = scmp.ne.s32.totalorder %s17_s10, %s86_s13  ;;  %p92_p2 = scmp.lt.s32.totalorder %s86_s13, %s86_s13 }
   0x7   :  { %p93_p3 = por %p92_p2, %p91_p1 }
   0x9   :  { %p94_p4 = pnand %p93_p3, %p87_p0 }
   0xb   :  { %97 = shalt.err (!%p94_p4)
}
   0xc   :  { %19 = dma.hbm_to_vmem [thread:$0]  %s172_s0, 64, %s17_s10, [#allocation3]  }
   0xd   :  { %s106_s16 = scalar_lea.vmem %s27_s12, 32  ;;  %p111_p6 = scmp.lt.s32.totalorder %s27_s12, %s27_s12 }
   0xe   :  { %p107_p5 = scmp.ne.s32.totalorder %s27_s12, %s106_s16  ;;  %p112_p7 = scmp.lt.s32.totalorder %s106_s16, %s106_s16 }
  0x10   :  { %p113_p8 = por %p112_p7, %p111_p6 }
  0x12   :  { %p114_p9 = pnand %p113_p8, %p107_p5 }
  0x14   :  { %117 = shalt.err (!%p114_p9)
}
  0x15   :  { %29 = dma.hbm_to_vmem [thread:$0]  %s173_s1, 32, %s27_s12, [#allocation6]  }
  0x16   :  { %138 = dma.done.wait [#allocation3], 64  }
  0x17   :  { %139 = vsyncadd [#allocation3], 4294967232 }
  0x18   :  { %140 = dma.done.wait [#allocation6], 32  }
  0x19   :  { %141 = vsyncadd [#allocation6], 4294967264  ;;  %v39_v0 = vlaneseq  ;;  %v146_v1 = vmov 1983009808   ;;  %v37_v7 = vld [vmem:[#allocation5] sm:$0x3] }
  0x1a   :  { %v49_v2 = vunpack.c.l.s4 %v146_v1  ;;  %v36_v12 = vld [vmem:[#allocation2] sm:$0xf]  ;;  %s147_s0 = smov [#allocation7]  }
  0x1b   :  { %v40_v3 = vshrl.u32 %v39_v0, 7  ;;  %s64_s19 = sshll.u32 %s147_s0, 4  ;;  %s65_s19 = int_to_ptr.vmem [resolvable:$true] %s64_s19 }
  0x1c   :  { %v50_v6 = vunpack.c.0.s8 %v49_v2  ;;  %s118_s1 = scalar_lea.vmem %s65_s19, 64  ;;  %p123_p11 = scmp.lt.s32.totalorder %s65_s19, %s65_s19 }
  0x1d   :  { %v41_v4 = vsub.s32 0, %v40_v3  ;;  %v45_v5 = vsub.s32 1, %v40_v3  ;;  %p119_p10 = scmp.ne.s32.totalorder %s65_s19, %s118_s1  ;;  %p124_p12 = scmp.lt.s32.totalorder %s118_s1, %s118_s1 }
  0x1e   :  { %v53_v10 = vsub.s32 %v50_v6, %v40_v3 }
  0x1f   :  { %v42_v8 = vrot.slane %v37_v7, %v41_v4  ;;  %v46_v9 = vrot.slane %v37_v7, %v45_v5  ;;  %p125_p13 = por %p124_p12, %p123_p11 }
  0x21   :  { %v47_v11 = vcombine.low %v42_v8, %v46_v9  ;;  %p126_p0 = pnand %p125_p13, %p119_p10 }
  0x23   :  { %v54_v13 = vrot.slane %v47_v11, %v53_v10 }
  0x25   :  { %v56_v14 = vadd.f32 %v54_v13, %v36_v12 }
  0x27   :  { %57 = vst [vmem:[#allocation7] sm:$0xf] %v56_v14 }
  0x28   :  { %129 = shalt.err (!%p126_p0)
}
  0x29   :  { %67 = dma.vmem_to_hbm [thread:$0]  %s65_s19, 64, %s174_s2, [#allocation4]  }
  0x2a   :  { %142 = dma.done.wait [#allocation4], 64  }
  0x2b   :  { %143 = vsyncadd [#allocation4], 4294967232 }
  0x2c   :  { %71 = vsyncpa [#allocation3], 1 }
  0x2d   :  { %72 = vsyncpa [#allocation6], 1 }
  0x2e   :  { %73 = vsyncpa [#allocation4], 1 }

</bundles_post_ra>
